<compile_context>
chip_gen: v5e
topology: v5e:2x2
jax: 0.10.0
libtpu: 0.0.40
codegen_flags: <defaults>
</compile_context>

<pallas_src>
import jax
import jax.numpy as jnp
from jax.experimental import pallas as pl
from jax.experimental.pallas import tpu as pltpu


_TARGET_LANES = 512        # keep merging trailing dims until at least this lane-dense
_MAX_MERGED_LANES = 4096   # ... but stop merging once the merged width exceeds this


def _round_up(a, b):
    return -(-a // b) * b


def _device_kind():
    try:
        return jax.devices()[0].device_kind.lower()
    except Exception:  # no TPU visible at trace time
        return ""


def _make_minmax_kernel(block_rows, p_sub, rows_total, fill_hi, fill_lo,
                        stat_dtype, stat_hi, stat_lo, needs_mask, accumulate):
    """Build the per-block min/max kernel (all config is static, closed over)."""

    def kernel(x_ref, min_ref, max_ref):
        x = x_ref[...]                                  # (block_rows, K), native dtype
        if needs_mask:
            # Ragged last block: rows >= rows_total hold undefined (stale) data.
            row = jax.lax.broadcasted_iota(jnp.int32, x.shape, 0)
            row = row + pl.program_id(0) * block_rows
            valid = row < rows_total
            x_min_in = jnp.where(valid, x, jnp.asarray(fill_hi, x.dtype))
            x_max_in = jnp.where(valid, x, jnp.asarray(fill_lo, x.dtype))
        else:
            x_min_in = x
            x_max_in = x

        k = x.shape[-1]
        if p_sub == 8:
            # Pure-VPU reduce: each 8-row group maps to whole vregs, so the
            # axis-0 reduce is elementwise across slabs (no XLU pass).
            pmin = x_min_in.reshape(block_rows // 8, 8, k).min(axis=0)
            pmax = x_max_in.reshape(block_rows // 8, 8, k).max(axis=0)
        else:
            pmin = x_min_in.min(axis=0, keepdims=True)
            pmax = x_max_in.max(axis=0, keepdims=True)
        pmin = pmin.astype(stat_dtype)
        pmax = pmax.astype(stat_dtype)

        if accumulate:
            # Single resident accumulator (out index_map is constant).
            @pl.when(pl.program_id(0) == 0)
            def _():
                min_ref[...] = jnp.full(min_ref.shape, stat_hi, stat_dtype)
                max_ref[...] = jnp.full(max_ref.shape, stat_lo, stat_dtype)

            min_ref[...] = jnp.minimum(min_ref[...], pmin)
            max_ref[...] = jnp.maximum(max_ref[...], pmax)
        else:
            # Independent per-block partials (grid axis is "parallel").
            min_ref[...] = pmin
            max_ref[...] = pmax

    return kernel


def observer_forward(x, *, block_bytes=None, use_partials=None):
    """Concrete observer forward: returns (x, min(x), max(x)).

    x is returned untouched (identity pass-through, no device copy); the
    statistics are computed by a single streaming Pallas kernel that reads
    the tensor exactly once.
    """
    dtype = x.dtype
    total = int(x.size)
    itemsize = jnp.dtype(dtype).itemsize

    if jnp.issubdtype(dtype, jnp.floating):
        stat_dtype = jnp.float32
        fill_hi, fill_lo = float("inf"), float("-inf")
        stat_hi, stat_lo = float("inf"), float("-inf")
    elif jnp.issubdtype(dtype, jnp.unsignedinteger):
        stat_dtype = jnp.uint32
        info = jnp.iinfo(dtype)
        fill_hi, fill_lo = int(info.max), int(info.min)
        sinfo = jnp.iinfo(stat_dtype)
        stat_hi, stat_lo = int(sinfo.max), int(sinfo.min)
    elif jnp.issubdtype(dtype, jnp.integer):
        stat_dtype = jnp.int32
        info = jnp.iinfo(dtype)
        fill_hi, fill_lo = int(info.max), int(info.min)
        sinfo = jnp.iinfo(stat_dtype)
        stat_hi, stat_lo = int(sinfo.max), int(sinfo.min)
    else:
        # TODO(synk): bool / complex observers have no Pallas path; XLA stats.
        return x, jnp.min(x), jnp.max(x)

    if total == 0:
        # TODO(synk): observing an empty tensor is undefined; return identity elements.
        return x, jnp.asarray(stat_hi, stat_dtype), jnp.asarray(stat_lo, stat_dtype)
    if x.ndim == 0:
        s = x.astype(stat_dtype)
        return x, s, s

    packing = max(1, 4 // itemsize)
    row_align = 8 * packing        # sublane alignment: 8 rows f32, 16 bf16, 32 int8

    kind = _device_kind()
    is_v7 = "v7" in kind
    if use_partials is None:
        use_partials = is_v7       # 2 TensorCores/chip -> independent per-block partials
    if block_bytes is None:
        block_bytes = (6 << 20) if is_v7 else (4 << 20)

    # Lane-dense 2-D view (M, K): merge trailing dims until the width reaches
    # _TARGET_LANES (keep merging while still <= _MAX_MERGED_LANES).  A
    # contiguous reshape is a free bitcast -> no pad / slice copy in HBM.
    shape = x.shape
    K = 1
    split = len(shape)
    while split > 0 and (K < _TARGET_LANES or K * shape[split - 1] <= _MAX_MERGED_LANES):
        K *= shape[split - 1]
        split -= 1
    M = total // K
    x2d = x.reshape(M, K)

    # One sublane-aligned slab of rows must fit the block budget; otherwise
    # the trailing dim is pathologically wide for this tiling scheme.
    if _round_up(K, 128) * itemsize * row_align > block_bytes:
        # TODO(synk): extremely wide trailing dim; fall back to plain XLA stats.
        return x, jnp.min(x).astype(stat_dtype), jnp.max(x).astype(stat_dtype)

    bytes_per_row = K * itemsize
    cap_rows = block_bytes // bytes_per_row
    if M <= cap_rows:
        block_rows = M
        if use_partials and M >= 2 * row_align and M * bytes_per_row >= (2 << 20):
            # Split large single-block tensors in two so both v7x cores get work.
            block_rows = _round_up((M + 1) // 2, row_align)
    else:
        block_rows = (cap_rows // row_align) * row_align
        if block_rows == 0:
            # TODO(synk): cannot form a sublane-aligned tile; plain XLA fallback.
            return x, jnp.min(x).astype(stat_dtype), jnp.max(x).astype(stat_dtype)

    n_blocks = -(-M // block_rows)
    needs_mask = (n_blocks * block_rows) != M
    p_sub = 8 if (block_rows % 8 == 0) else 1

    kernel = _make_minmax_kernel(block_rows, p_sub, M, fill_hi, fill_lo,
                                 stat_dtype, stat_hi, stat_lo, needs_mask,
                                 accumulate=not use_partials)

    out_rows = n_blocks * p_sub if use_partials else p_sub
    if use_partials:
        out_index = lambda i: (i, 0)
        semantics = ("parallel",)
    else:
        out_index = lambda i: (0, 0)
        semantics = ("arbitrary",)

    out_bytes = 2 * out_rows * K * jnp.dtype(stat_dtype).itemsize
    mn_part, mx_part = pl.pallas_call(
        kernel,
        out_shape=(jax.ShapeDtypeStruct((out_rows, K), stat_dtype),
                   jax.ShapeDtypeStruct((out_rows, K), stat_dtype)),
        grid=(n_blocks,),
        in_specs=[pl.BlockSpec((block_rows, K), lambda i: (i, 0))],
        out_specs=(pl.BlockSpec((p_sub, K), out_index),
                   pl.BlockSpec((p_sub, K), out_index)),
        compiler_params=pltpu.CompilerParams(
            dimension_semantics=semantics,
            vmem_limit_bytes=(48 << 20) if is_v7 else (64 << 20),
        ),
        cost_estimate=pl.CostEstimate(
            flops=2 * total,                         # two compares per element
            transcendentals=0,
            bytes_accessed=total * itemsize + out_bytes,
        ),
    )(x2d)

    # Tiny final reduce over the (<= n_blocks*8, K) partials in plain XLA.
    mn = jnp.min(mn_part)
    mx = jnp.max(mx_part)
    return x, mn, mx


if __name__ == "__main__":
    key = jax.random.PRNGKey(0)
    k1, k2, k3, k4 = jax.random.split(key, 4)

    # Canonical observer input: small NCHW conv activation.
    x = jax.random.normal(k1, (4, 8, 16, 16), dtype=jnp.float32)
    y, mn, mx = observer_forward(x)
    jax.block_until_ready((y, mn, mx))
    assert y.shape == x.shape and y.dtype == x.dtype
    assert bool(jnp.all(y == x))
    assert bool(jnp.isclose(mn, jnp.min(x).astype(jnp.float32)))
    assert bool(jnp.isclose(mx, jnp.max(x).astype(jnp.float32)))

    # Multi-block grid with a ragged (masked) last block; exercise both
    # reduction modes: per-block partials ("parallel", v7x-style) and a
    # resident accumulator ("arbitrary", v5e/v6e-style).
    x2 = jax.random.normal(k2, (40, 8, 8, 8), dtype=jnp.float32)
    for partials in (True, False):
        _, mn2, mx2 = observer_forward(x2, block_bytes=16 * 512 * 4,
                                       use_partials=partials)
        jax.block_until_ready((mn2, mx2))
        assert bool(jnp.isclose(mn2, jnp.min(x2)))
        assert bool(jnp.isclose(mx2, jnp.max(x2)))

    # Odd (non-128-multiple) trailing width, handled via logical-shape blocks.
    x3 = jax.random.normal(k3, (3, 5, 17, 13), dtype=jnp.float32)
    _, mn3, mx3 = observer_forward(x3)
    jax.block_until_ready((mn3, mx3))
    assert bool(jnp.isclose(mn3, jnp.min(x3)))
    assert bool(jnp.isclose(mx3, jnp.max(x3)))

    # Native-dtype reduction paths: bf16 and int8.
    x4 = jax.random.normal(k4, (4, 8, 16, 16), dtype=jnp.bfloat16)
    _, mn4, mx4 = observer_forward(x4)
    jax.block_until_ready((mn4, mx4))
    assert bool(jnp.isclose(mn4, jnp.min(x4).astype(jnp.float32)))
    assert bool(jnp.isclose(mx4, jnp.max(x4).astype(jnp.float32)))

    x5 = jax.random.randint(k1, (4, 8, 16, 16), -128, 128,
                            dtype=jnp.int32).astype(jnp.int8)
    _, mn5, mx5 = observer_forward(x5)
    jax.block_until_ready((mn5, mx5))
    assert int(mn5) == int(jnp.min(x5)) and int(mx5) == int(jnp.max(x5))

    print("KERNEL_OK")
</pallas_src>

<mosaic_0001>
module attributes {stable_mosaic.version = 11 : i64} {
  func.func @kernel(%arg0: i32, %arg1: memref<4x2048xf32, #tpu.memory_space<vmem>>, %arg2: memref<1x2048xf32, #tpu.memory_space<vmem>>, %arg3: memref<1x2048xf32, #tpu.memory_space<vmem>>) attributes {dimension_semantics = [#tpu.dimension_semantics<arbitrary>], iteration_bounds = array<i64: 1>, scalar_prefetch = 0 : i64, scratch_operands = 0 : i64, tpu.core_type = #tpu.core_type<tc>, window_params = [{transform_indices = @transform_0, window_bounds = array<i64: 4, 2048>}, {pipeline_mode = #tpu.pipeline_mode<synchronous>, transform_indices = @transform_1, window_bounds = array<i64: 1, 2048>}, {pipeline_mode = #tpu.pipeline_mode<synchronous>, transform_indices = @transform_2, window_bounds = array<i64: 1, 2048>}]} {
    %c0 = arith.constant 0 : index
    %c0_0 = arith.constant 0 : index
    %0 = vector.load %arg1[%c0, %c0_0] : memref<4x2048xf32, #tpu.memory_space<vmem>>, vector<4x2048xf32>
    %cst = arith.constant dense<0x7F800000> : vector<2048xf32>
    %1 = vector.multi_reduction <minimumf>, %0, %cst [0] : vector<4x2048xf32> to vector<2048xf32>
    %2 = vector.shape_cast %1 : vector<2048xf32> to vector<1x2048xf32>
    %cst_1 = arith.constant dense<0xFF800000> : vector<2048xf32>
    %3 = vector.multi_reduction <maximumf>, %0, %cst_1 [0] : vector<4x2048xf32> to vector<2048xf32>
    %4 = vector.shape_cast %3 : vector<2048xf32> to vector<1x2048xf32>
    %c0_i32 = arith.constant 0 : i32
    %5 = arith.cmpi eq, %arg0, %c0_i32 : i32
    %6 = arith.extui %5 : i1 to i32
    %c0_i32_2 = arith.constant 0 : i32
    %7 = arith.cmpi ne, %6, %c0_i32_2 : i32
    scf.if %7 {
      %cst_11 = arith.constant 0x7F800000 : f32
      %14 = vector.broadcast %cst_11 : f32 to vector<1x2048xf32>
      %c0_12 = arith.constant 0 : index
      %c0_13 = arith.constant 0 : index
      %15 = vector.load %arg2[%c0_12, %c0_13] : memref<1x2048xf32, #tpu.memory_space<vmem>>, vector<1x2048xf32>
      tpu.vector_store %arg2[%c0_12, %c0_13], %14 {strides = array<i32>} : memref<1x2048xf32, #tpu.memory_space<vmem>>, vector<1x2048xf32>,
      %cst_14 = arith.constant 0xFF800000 : f32
      %16 = vector.broadcast %cst_14 : f32 to vector<1x2048xf32>
      %c0_15 = arith.constant 0 : index
      %c0_16 = arith.constant 0 : index
      %17 = vector.load %arg3[%c0_15, %c0_16] : memref<1x2048xf32, #tpu.memory_space<vmem>>, vector<1x2048xf32>
      tpu.vector_store %arg3[%c0_15, %c0_16], %16 {strides = array<i32>} : memref<1x2048xf32, #tpu.memory_space<vmem>>, vector<1x2048xf32>,
    } else {
    }
    %c0_3 = arith.constant 0 : index
    %c0_4 = arith.constant 0 : index
    %8 = vector.load %arg2[%c0_3, %c0_4] : memref<1x2048xf32, #tpu.memory_space<vmem>>, vector<1x2048xf32>
    %9 = arith.minimumf %8, %2 : vector<1x2048xf32>
    %c0_5 = arith.constant 0 : index
    %c0_6 = arith.constant 0 : index
    %10 = vector.load %arg2[%c0_5, %c0_6] : memref<1x2048xf32, #tpu.memory_space<vmem>>, vector<1x2048xf32>
    tpu.vector_store %arg2[%c0_5, %c0_6], %9 {strides = array<i32>} : memref<1x2048xf32, #tpu.memory_space<vmem>>, vector<1x2048xf32>,
    %c0_7 = arith.constant 0 : index
    %c0_8 = arith.constant 0 : index
    %11 = vector.load %arg3[%c0_7, %c0_8] : memref<1x2048xf32, #tpu.memory_space<vmem>>, vector<1x2048xf32>
    %12 = arith.maximumf %11, %4 : vector<1x2048xf32>
    %c0_9 = arith.constant 0 : index
    %c0_10 = arith.constant 0 : index
    %13 = vector.load %arg3[%c0_9, %c0_10] : memref<1x2048xf32, #tpu.memory_space<vmem>>, vector<1x2048xf32>
    tpu.vector_store %arg3[%c0_9, %c0_10], %12 {strides = array<i32>} : memref<1x2048xf32, #tpu.memory_space<vmem>>, vector<1x2048xf32>,
    return
  }
  func.func @transform_0(%arg0: i32) -> (i32, i32) {
    %c0_i32 = arith.constant 0 : i32
    %c0_i32_0 = arith.constant 0 : i32
    return %arg0, %c0_i32 : i32, i32
  }
  func.func @transform_1(%arg0: i32) -> (i32, i32) {
    %c0_i32 = arith.constant 0 : i32
    %c0_i32_0 = arith.constant 0 : i32
    %c0_i32_1 = arith.constant 0 : i32
    return %c0_i32, %c0_i32_0 : i32, i32
  }
  func.func @transform_2(%arg0: i32) -> (i32, i32) {
    %c0_i32 = arith.constant 0 : i32
    %c0_i32_0 = arith.constant 0 : i32
    %c0_i32_1 = arith.constant 0 : i32
    return %c0_i32, %c0_i32_0 : i32, i32
  }
}

</mosaic_0001>

<bundles_post_ra>
// kernel: tpu_custom_call.1
= control target key start
LH: loop header
LB: loop body
LE: loop exit
PB: predicated region body
PF: predicated region fallthrough
CT: control target
= control target key end

     0   :  { %8 = vsyncpa [#allocation3], 0  ;;  %s739_s0 = inlined_call_operand.hbm [shape: f32[4,2048], index: 0, kind: input, shape index: {}]   ;;  %s740_s1 = inlined_call_operand.hbm [shape: f32[1,2048], index: 1, kind: output, shape index: {0}]   ;;  %s741_s2 = inlined_call_operand.hbm [shape: f32[1,2048], index: 2, kind: output, shape index: {1}]  }
   0x1   :  { %9 = vsyncpa [#allocation4], 0 }
   0x2   :  { %10 = vsyncpa [#allocation7], 0  ;;  %s16_s11 = sshll.u32 %s739_s0, 4  ;;  %s587_s12 = smov [#allocation2]   ;;  %s17_s11 = int_to_ptr.hbm [resolvable:$true] %s16_s11 }
   0x3   :  { %s18_s13 = sshll.u32 %s587_s12, 4  ;;  %s19_s13 = int_to_ptr.vmem [resolvable:$true] %s18_s13 }
   0x4   :  { %21 = dma.hbm_to_vmem [thread:$0]  %s17_s11, 1024, %s19_s13, [#allocation3]  }
   0x5   :  { %581 = dma.done.wait [#allocation3], 1024  }
   0x6   :  { %582 = vsyncadd [#allocation3], 4294966272  ;;  %v608_v0 = vld [vmem:[#allocation2] sm:$0xff]  ;;  %v610_v1 = vld [vmem:[#allocation2 + $0x8] sm:$0xff]  ;;  %vm85_vm0 = vcmask 1043456   ;;  %vm393_vm1 = vcmask 1040384  }
   0x7   :  { %v612_v2 = vld [vmem:[#allocation2 + $0x10] sm:$0xff]  ;;  %42 = vst [vmem:[#allocation1] ss:$2 sm:$0xff] %v608_v0  ;;  %v615_v3 = vld [vmem:[#allocation2 + $0x18] sm:$0xff]  ;;  %v620_v4 = vld [vmem:[#allocation2 + $0x20] sm:$0xff]  ;;  %vm395_vm2 = vcmask 1042434  }
   0x8   :  { %44 = vst [vmem:[#allocation1 + $0x10] ss:$2 sm:$0xff] %v610_v1  ;;  %v625_v9 = vld [vmem:[#allocation2 + $0x28] sm:$0xff]  ;;  %v630_v19 = vld [vmem:[#allocation2 + $0x30] sm:$0xff]  ;;  %v635_v30 = vld [vmem:[#allocation2 + $0x38] sm:$0xff]  ;;  %vm399_vm3 = vcmask 1044484  }
   0x9   :  { %46 = vst [vmem:[#allocation1 + $0x20] ss:$2 sm:$0xff] %v612_v2  ;;  %vm397_vm4 = vcmask 1041408   ;;  %vm401_vm5 = vcmask 1046534   ;;  %vm403_vm6 = vcmask 1045508   ;;  %s588_s0 = smov [#allocation5]  }
   0xa   :  { %48 = vst [vmem:[#allocation1 + $0x30] ss:$2 sm:$0xff] %v615_v3  ;;  %s704_s14 = sshll.u32 %s588_s0, 4  ;;  %s478_s17 = sshll.u32 %s740_s1, 4  ;;  %s477_s14 = int_to_ptr.vmem [resolvable:$true] %s704_s14  ;;  %s479_s17 = int_to_ptr.hbm [resolvable:$true] %s478_s17 }
   0xb   :  { %s589_s1 = smov [#allocation6]   ;;  %s489_s21 = sshll.u32 %s741_s2, 4  ;;  %s490_s21 = int_to_ptr.hbm [resolvable:$true] %s489_s21 }
   0xc   :  { %s487_s18 = sshll.u32 %s589_s1, 4  ;;  %s488_s18 = int_to_ptr.vmem [resolvable:$true] %s487_s18 }
   0xe   :  { %v49_v5 = vld.sshfl [vmem:[#allocation1] sm:$0xff pattern:$0x75316420]  ;;  %v50_v6 = vld.sshfl [vmem:[#allocation1 + $0x8] sm:$0xff pattern:$0x75316420] }
   0xf   :  { %57 = vst [vmem:[#allocation1] ss:$2 sm:$0xff] %v620_v4  ;;  %v86_v7 = vsel %vm85_vm0, %v49_v5, inf  ;;  %v93_v8 = vsel %vm85_vm0, %v50_v6, inf }
  0x10   :  { %v87_v10 = vrot.slane %v86_v7, 4  ;;  %v94_v11 = vrot.slane %v93_v8, 4  ;;  %v51_v12 = vld.sshfl [vmem:[#allocation1 + $0x10] sm:$0xff pattern:$0x75316420] }
  0x11   :  { %v52_v13 = vld.sshfl [vmem:[#allocation1 + $0x18] sm:$0xff pattern:$0x75316420]  ;;  %v100_v14 = vsel %vm85_vm0, %v51_v12, inf }
  0x12   :  { %v88_v15 = vmin.f32 %v86_v7, %v87_v10  ;;  %v95_v16 = vmin.f32 %v93_v8, %v94_v11  ;;  %58 = vst [vmem:[#allocation1 + $0x10] ss:$2 sm:$0xff] %v625_v9  ;;  %v101_v17 = vrot.slane %v100_v14, 4  ;;  %v107_v18 = vsel %vm85_vm0, %v52_v13, inf }
  0x13   :  { %v108_v20 = vrot.slane %v107_v18, 4  ;;  %v53_v21 = vld.sshfl [vmem:[#allocation1 + $0x20] sm:$0xff pattern:$0x75316420] }
  0x14   :  { %v89_v22 = vrot.slane %v88_v15, 2  ;;  %v96_v23 = vrot.slane %v95_v16, 2  ;;  %v102_v24 = vmin.f32 %v100_v14, %v101_v17  ;;  %v54_v25 = vld.sshfl [vmem:[#allocation1 + $0x28] sm:$0xff pattern:$0x75316420]  ;;  %v114_v26 = vsel %vm85_vm0, %v53_v21, inf }
  0x15   :  { %v109_v27 = vmin.f32 %v107_v18, %v108_v20  ;;  %59 = vst [vmem:[#allocation1 + $0x20] ss:$2 sm:$0xff] %v630_v19  ;;  %v115_v28 = vrot.slane %v114_v26, 4  ;;  %v121_v29 = vsel %vm85_vm0, %v54_v25, inf }
  0x16   :  { %v637_v31 = vmin.f32 %v88_v15, %v89_v22  ;;  %v97_v32 = vmin.f32 %v95_v16, %v96_v23  ;;  %v103_v33 = vrot.slane %v102_v24, 2  ;;  %v122_v34 = vrot.slane %v121_v29, 4  ;;  %v55_v35 = vld.sshfl [vmem:[#allocation1 + $0x30] sm:$0xff pattern:$0x75316420] }
  0x17   :  { %v110_v36 = vrot.slane %v109_v27, 2  ;;  %v116_v37 = vmin.f32 %v114_v26, %v115_v28  ;;  %v56_v38 = vld.sshfl [vmem:[#allocation1 + $0x38] sm:$0xff pattern:$0x75316420]  ;;  %v128_v39 = vsel %vm85_vm0, %v55_v35, inf }
  0x18   :  { %v91_v40 = vrot.slane %v637_v31, 1  ;;  %v98_v41 = vrot.slane %v97_v32, 1  ;;  %v104_v42 = vmin.f32 %v102_v24, %v103_v33  ;;  %v123_v43 = vmin.f32 %v121_v29, %v122_v34  ;;  %60 = vst [vmem:[#allocation1 + $0x30] ss:$2 sm:$0xff] %v635_v30 }
  0x19   :  { %v111_v44 = vmin.f32 %v109_v27, %v110_v36  ;;  %v117_v45 = vrot.slane %v116_v37, 2  ;;  %v129_v46 = vrot.slane %v128_v39, 4  ;;  %v135_v47 = vsel %vm85_vm0, %v56_v38, inf  ;;  %v61_v48 = vld.sshfl [vmem:[#allocation1] sm:$0xff pattern:$0x75316420] }
  0x1a   :  { %v643_v49 = vmin.f32 %v97_v32, %v98_v41  ;;  %v105_v50 = vrot.slane %v104_v42, 1  ;;  %v124_v51 = vrot.slane %v123_v43, 2  ;;  %v136_v52 = vrot.slane %v135_v47, 4  ;;  %v62_v53 = vld.sshfl [vmem:[#allocation1 + $0x8] sm:$0xff pattern:$0x75316420] }
  0x1b   :  { %v112_v54 = vrot.slane %v111_v44, 1  ;;  %v118_v55 = vmin.f32 %v116_v37, %v117_v45  ;;  %v130_v56 = vmin.f32 %v128_v39, %v129_v46  ;;  %v142_v57 = vsel %vm85_vm0, %v61_v48, inf  ;;  %198 = vst [vmem:[#allocation1] ss:$2 sm:$0xff] %v608_v0 }
  0x1c   :  { %v647_v58 = vmin.f32 %v104_v42, %v105_v50  ;;  %v125_v59 = vmin.f32 %v123_v43, %v124_v51  ;;  %v137_v60 = vmin.f32 %v135_v47, %v136_v52  ;;  %v143_v61 = vrot.slane %v142_v57, 4  ;;  %v63_v62 = vld.sshfl [vmem:[#allocation1 + $0x10] sm:$0xff pattern:$0x75316420] }
  0x1d   :  { %v649_v63 = vmin.f32 %v111_v44, %v112_v54  ;;  %v119_v5 = vrot.slane %v118_v55, 1  ;;  %v131_v6 = vrot.slane %v130_v56, 2  ;;  %v149_v7 = vsel %vm85_vm0, %v62_v53, inf  ;;  %v64_v8 = vld.sshfl [vmem:[#allocation1 + $0x18] sm:$0xff pattern:$0x75316420] }
  0x1e   :  { %v126_v10 = vrot.slane %v125_v59, 1  ;;  %v138_v11 = vrot.slane %v137_v60, 2  ;;  %v144_v12 = vmin.f32 %v142_v57, %v143_v61  ;;  %v150_v13 = vrot.slane %v149_v7, 4  ;;  %200 = vst [vmem:[#allocation1 + $0x10] ss:$2 sm:$0xff] %v610_v1 }
  0x1f   :  { %v653_v0 = vmin.f32 %v118_v55, %v119_v5  ;;  %v132_v14 = vmin.f32 %v130_v56, %v131_v6  ;;  %v156_v15 = vsel %vm85_vm0, %v63_v62, inf  ;;  %v163_v16 = vsel %vm85_vm0, %v64_v8, inf  ;;  %v65_v17 = vld.sshfl [vmem:[#allocation1 + $0x20] sm:$0xff pattern:$0x75316420] }
  0x20   :  { %v657_v18 = vmin.f32 %v125_v59, %v126_v10  ;;  %v139_v20 = vmin.f32 %v137_v60, %v138_v11  ;;  %v145_v21 = vrot.slane %v144_v12, 2  ;;  %v151_v22 = vmin.f32 %v149_v7, %v150_v13  ;;  %v66_v23 = vld.sshfl [vmem:[#allocation1 + $0x28] sm:$0xff pattern:$0x75316420] }
  0x21   :  { %v133_v24 = vrot.slane %v132_v14, 1  ;;  %v157_v25 = vrot.slane %v156_v15, 4  ;;  %v164_v26 = vrot.slane %v163_v16, 4  ;;  %v170_v1 = vsel %vm85_vm0, %v65_v17, inf  ;;  %202 = vst [vmem:[#allocation1 + $0x20] ss:$2 sm:$0xff] %v612_v2 }
  0x22   :  { %v140_v27 = vrot.slane %v139_v20, 1  ;;  %v152_v28 = vrot.slane %v151_v22, 2  ;;  %v171_v29 = vrot.slane %v170_v1, 4  ;;  %v177_v32 = vsel %vm85_vm0, %v66_v23, inf }
  0x23   :  { %v134_v33 = vmin.f32 %v132_v14, %v133_v24  ;;  %v158_v34 = vmin.f32 %v156_v15, %v157_v25  ;;  %v165_v35 = vmin.f32 %v163_v16, %v164_v26  ;;  %v178_v36 = vrot.slane %v177_v32, 4  ;;  %v67_v37 = vld.sshfl [vmem:[#allocation1 + $0x30] sm:$0xff pattern:$0x75316420] }
  0x24   :  { %v141_v38 = vmin.f32 %v139_v20, %v140_v27  ;;  %v172_v39 = vmin.f32 %v170_v1, %v171_v29  ;;  %v68_v41 = vld.sshfl [vmem:[#allocation1 + $0x38] sm:$0xff pattern:$0x75316420]  ;;  %v184_v42 = vsel %vm85_vm0, %v67_v37, inf  ;;  %v92_v2 = vmin.f32 %v637_v31, %v91_v40 }
  0x25   :  { %v159_v43 = vrot.slane %v158_v34, 2  ;;  %v166_v44 = vrot.slane %v165_v35, 2  ;;  %v179_v45 = vmin.f32 %v177_v32, %v178_v36  ;;  %v185_v46 = vrot.slane %v184_v42, 4  ;;  %204 = vst [vmem:[#allocation1 + $0x30] ss:$2 sm:$0xff] %v615_v3 }
  0x26   :  { %v173_v47 = vrot.slane %v172_v39, 2  ;;  %v191_v48 = vsel %vm85_vm0, %v68_v41, inf  ;;  %v205_v50 = vld.sshfl [vmem:[#allocation1] sm:$0xff pattern:$0x75316420]  ;;  %v379_v51 = vrot.slane %v643_v49, 7  ;;  %v146_v52 = vmin.f32 %v144_v12, %v145_v21 }
  0x27   :  { %v180_v53 = vrot.slane %v179_v45, 2  ;;  %v186_v54 = vmin.f32 %v184_v42, %v185_v46  ;;  %v192_v55 = vrot.slane %v191_v48, 4  ;;  %v669_v56 = vld.sshfl [vmem:[#allocation1 + $0x8] sm:$0xff pattern:$0x75316420]  ;;  %v380_v31 = vrot.slane %v647_v58, 6 }
  0x28   :  { %213 = vst [vmem:[#allocation1] ss:$2 sm:$0xff] %v620_v4  ;;  %v673_v40 = vld.sshfl [vmem:[#allocation1 + $0x10] sm:$0xff pattern:$0x75316420]  ;;  %v381_v3 = vrot.slane %v649_v63, 5  ;;  %v394_v57 = vsel %vm393_vm1, %v92_v2, %v379_v51  ;;  %v153_v59 = vmin.f32 %v151_v22, %v152_v28  ;;  %v160_v60 = vmin.f32 %v158_v34, %v159_v43 }
  0x29   :  { %v187_v61 = vrot.slane %v186_v54, 2  ;;  %v193_v49 = vmin.f32 %v191_v48, %v192_v55  ;;  %v208_v62 = vld.sshfl [vmem:[#allocation1 + $0x18] sm:$0xff pattern:$0x75316420]  ;;  %v382_v5 = vrot.slane %v653_v0, 4  ;;  %v383_v6 = vrot.slane %v657_v18, 3 }
  0x2a   :  { %214 = vst [vmem:[#allocation1 + $0x10] ss:$2 sm:$0xff] %v625_v9  ;;  %v209_v58 = vld.sshfl [vmem:[#allocation1 + $0x20] sm:$0xff pattern:$0x75316420]  ;;  %v384_v7 = vrot.slane %v134_v33, 2  ;;  %v396_v4 = vsel %vm395_vm2, %v380_v31, %v381_v3  ;;  %v167_v8 = vmin.f32 %v165_v35, %v166_v44  ;;  %v174_v10 = vmin.f32 %v172_v39, %v173_v47 }
  0x2b   :  { %v194_v63 = vrot.slane %v193_v49, 2  ;;  %v210_v11 = vld.sshfl [vmem:[#allocation1 + $0x28] sm:$0xff pattern:$0x75316420]  ;;  %v385_v12 = vrot.slane %v141_v38, 1  ;;  %v400_v13 = vsel %vm399_vm3, %v382_v5, %v383_v6  ;;  %v398_v0 = vsel %vm397_vm4, %v394_v57, %v396_v4 }
  0x2c   :  { %215 = vst [vmem:[#allocation1 + $0x20] ss:$2 sm:$0xff] %v630_v19  ;;  %v211_v14 = vld.sshfl [vmem:[#allocation1 + $0x30] sm:$0xff pattern:$0x75316420]  ;;  %v147_v15 = vrot.slane %v146_v52, 1  ;;  %v181_v16 = vmin.f32 %v179_v45, %v180_v53  ;;  %v188_v9 = vmin.f32 %v186_v54, %v187_v61 }
  0x2d   :  { %v684_v17 = vld.sshfl [vmem:[#allocation1 + $0x38] sm:$0xff pattern:$0x75316420]  ;;  %v402_v18 = vsel %vm401_vm5, %v384_v7, %v385_v12  ;;  %v154_v20 = vrot.slane %v153_v59, 1  ;;  %v161_v21 = vrot.slane %v160_v60, 1  ;;  %v168_v22 = vrot.slane %v167_v8, 1 }
  0x2e   :  { %216 = vst [vmem:[#allocation1 + $0x30] ss:$2 sm:$0xff] %v635_v30  ;;  %v404_v23 = vsel %vm403_vm6, %v400_v13, %v402_v18  ;;  %v148_v24 = vmin.f32 %v146_v52, %v147_v15  ;;  %v175_v25 = vrot.slane %v174_v10, 1  ;;  %v182_v19 = vrot.slane %v181_v16, 1 }
  0x2f   :  { %v405_v26 = vsel %vm85_vm0, %v398_v0, %v404_v23  ;;  %v155_v1 = vmin.f32 %v153_v59, %v154_v20  ;;  %v162_v27 = vmin.f32 %v160_v60, %v161_v21  ;;  %v169_v28 = vmin.f32 %v167_v8, %v168_v22  ;;  %v217_v21 = vld.sshfl [vmem:[#allocation1] sm:$0xff pattern:$0x75316420] }
  0x30   :  { %v176_v29 = vmin.f32 %v174_v10, %v175_v25  ;;  %v183_v32 = vmin.f32 %v181_v16, %v182_v19  ;;  %v189_v33 = vrot.slane %v188_v9, 1  ;;  %v195_v34 = vmin.f32 %v193_v49, %v194_v63  ;;  %417 = vst [vmem:[#allocation5] sm:$0xff] %v405_v26 }
  0x31   :  { %v386_v35 = vrot.slane %v155_v1, 7  ;;  %v387_v36 = vrot.slane %v162_v27, 6  ;;  %v388_v37 = vrot.slane %v169_v28, 5  ;;  %v241_v41 = vsel %vm85_vm0, %v205_v50, -inf }
  0x32   :  { %v190_v38 = vmin.f32 %v188_v9, %v189_v33  ;;  %v389_v30 = vrot.slane %v176_v29, 4  ;;  %v390_v39 = vrot.slane %v183_v32, 3  ;;  %v196_v42 = vrot.slane %v195_v34, 1 }
  0x33   :  { %v406_v2 = vsel %vm393_vm1, %v148_v24, %v386_v35  ;;  %v407_v43 = vsel %vm395_vm2, %v387_v36, %v388_v37  ;;  %v242_v44 = vrot.slane %v241_v41, 4  ;;  %v248_v48 = vsel %vm85_vm0, %v669_v56, -inf }
  0x34   :  { %v391_v45 = vrot.slane %v190_v38, 2  ;;  %v408_v46 = vsel %vm397_vm4, %v406_v2, %v407_v43  ;;  %v409_v47 = vsel %vm399_vm3, %v389_v30, %v390_v39  ;;  %v197_v51 = vmin.f32 %v195_v34, %v196_v42  ;;  %v218_v38 = vld.sshfl [vmem:[#allocation1 + $0x8] sm:$0xff pattern:$0x75316420] }
  0x35   :  { %v243_v52 = vmax.f32 %v241_v41, %v242_v44  ;;  %v249_v53 = vrot.slane %v248_v48, 4  ;;  %v255_v50 = vsel %vm85_vm0, %v673_v40, -inf  ;;  %v262_v55 = vsel %vm85_vm0, %v208_v62, -inf  ;;  %v219_v41 = vld.sshfl [vmem:[#allocation1 + $0x10] sm:$0xff pattern:$0x75316420] }
  0x36   :  { %v256_v54 = vrot.slane %v255_v50, 4  ;;  %v269_v31 = vsel %vm85_vm0, %v209_v58, -inf  ;;  %v276_v3 = vsel %vm85_vm0, %v210_v11, -inf  ;;  %v392_v57 = vrot.slane %v197_v51, 1 }
  0x37   :  { %v244_v59 = vrot.slane %v243_v52, 2  ;;  %v250_v60 = vmax.f32 %v248_v48, %v249_v53  ;;  %v263_v61 = vrot.slane %v262_v55, 4  ;;  %v270_v5 = vrot.slane %v269_v31, 4  ;;  %v220_v44 = vld.sshfl [vmem:[#allocation1 + $0x18] sm:$0xff pattern:$0x75316420] }
  0x38   :  { %v257_v49 = vmax.f32 %v255_v50, %v256_v54  ;;  %v277_v56 = vrot.slane %v276_v3, 4  ;;  %v283_v6 = vsel %vm85_vm0, %v211_v14, -inf  ;;  %v410_v7 = vsel %vm401_vm5, %v391_v45, %v392_v57  ;;  %v222_v50 = vld.sshfl [vmem:[#allocation1 + $0x28] sm:$0xff pattern:$0x75316420] }
  0x39   :  { %v245_v4 = vmax.f32 %v243_v52, %v244_v59  ;;  %v251_v40 = vrot.slane %v250_v60, 2  ;;  %v264_v8 = vmax.f32 %v262_v55, %v263_v61  ;;  %v411_v62 = vsel %vm403_vm6, %v409_v47, %v410_v7  ;;  %v221_v47 = vld.sshfl [vmem:[#allocation1 + $0x20] sm:$0xff pattern:$0x75316420] }
  0x3a   :  { %v258_v58 = vrot.slane %v257_v49, 2  ;;  %v271_v10 = vmax.f32 %v269_v31, %v270_v5  ;;  %v278_v63 = vmax.f32 %v276_v3, %v277_v56  ;;  %v412_v11 = vsel %vm85_vm0, %v408_v46, %v411_v62  ;;  %v223_v56 = vld.sshfl [vmem:[#allocation1 + $0x30] sm:$0xff pattern:$0x75316420] }
  0x3b   :  { %v252_v12 = vmax.f32 %v250_v60, %v251_v40  ;;  %v265_v13 = vrot.slane %v264_v8, 2  ;;  %v246_v16 = vrot.slane %v245_v4, 1  ;;  %v284_v20 = vrot.slane %v283_v6, 4  ;;  %418 = vst [vmem:[#allocation5 + $0x8] sm:$0xff] %v412_v11 }
  0x3c   :  { %v259_v14 = vmax.f32 %v257_v49, %v258_v58  ;;  %v272_v0 = vrot.slane %v271_v10, 2  ;;  %v279_v15 = vrot.slane %v278_v63, 2  ;;  %v290_v25 = vsel %vm85_vm0, %v684_v17, -inf  ;;  %481 = dma.vmem_to_hbm [thread:$0]  %s477_s14, 256, %s479_s17, [#allocation4]  }
  0x3d   :  { %v253_v9 = vrot.slane %v252_v12, 1  ;;  %v266_v18 = vmax.f32 %v264_v8, %v265_v13  ;;  %v285_v1 = vmax.f32 %v283_v6, %v284_v20  ;;  %v291_v27 = vrot.slane %v290_v25, 4 }
  0x3e   :  { %v260_v22 = vrot.slane %v259_v14, 1  ;;  %v273_v23 = vmax.f32 %v271_v10, %v272_v0  ;;  %v280_v24 = vmax.f32 %v278_v63, %v279_v15  ;;  %v297_v33 = vsel %vm85_vm0, %v217_v21, -inf }
  0x3f   :  { %v254_v19 = vmax.f32 %v252_v12, %v253_v9  ;;  %v267_v26 = vrot.slane %v266_v18, 1  ;;  %v286_v35 = vrot.slane %v285_v1, 2  ;;  %v292_v36 = vmax.f32 %v290_v25, %v291_v27 }
  0x40   :  { %v261_v28 = vmax.f32 %v259_v14, %v260_v22  ;;  %v274_v29 = vrot.slane %v273_v23, 1  ;;  %v281_v32 = vrot.slane %v280_v24, 1  ;;  %v298_v42 = vrot.slane %v297_v33, 4 }
  0x41   :  { %v268_v34 = vmax.f32 %v266_v18, %v267_v26  ;;  %v437_v37 = vrot.slane %v254_v19, 7  ;;  %v247_v17 = vmax.f32 %v245_v4, %v246_v16  ;;  %v287_v2 = vmax.f32 %v285_v1, %v286_v35  ;;  %v224_v19 = vld.sshfl [vmem:[#allocation1 + $0x38] sm:$0xff pattern:$0x75316420] }
  0x42   :  { %v275_v30 = vmax.f32 %v273_v23, %v274_v29  ;;  %v282_v39 = vmax.f32 %v280_v24, %v281_v32  ;;  %v293_v43 = vrot.slane %v292_v36, 2  ;;  %v438_v45 = vrot.slane %v261_v28, 6 }
  0x43   :  { %v439_v46 = vrot.slane %v268_v34, 5  ;;  %v304_v48 = vsel %vm85_vm0, %v218_v38, -inf  ;;  %v288_v51 = vrot.slane %v287_v2, 1  ;;  %v451_v53 = vsel %vm393_vm1, %v247_v17, %v437_v37 }
  0x44   :  { %v294_v52 = vmax.f32 %v292_v36, %v293_v43  ;;  %v305_v54 = vrot.slane %v304_v48, 4  ;;  %v440_v55 = vrot.slane %v275_v30, 4  ;;  %v441_v31 = vrot.slane %v282_v39, 3 }
  0x45   :  { %v299_v3 = vmax.f32 %v297_v33, %v298_v42  ;;  %v311_v57 = vsel %vm85_vm0, %v219_v41, -inf  ;;  %v289_v59 = vmax.f32 %v287_v2, %v288_v51  ;;  %v452_v5 = vsel %vm395_vm2, %v438_v45, %v439_v46 }
  0x46   :  { %v295_v60 = vrot.slane %v294_v52, 1  ;;  %v306_v61 = vmax.f32 %v304_v48, %v305_v54  ;;  %v312_v49 = vrot.slane %v311_v57, 4  ;;  %v318_v6 = vsel %vm85_vm0, %v220_v44, -inf }
  0x47   :  { %v325_v7 = vsel %vm85_vm0, %v221_v47, -inf  ;;  %v332_v4 = vsel %vm85_vm0, %v222_v50, -inf  ;;  %v442_v8 = vrot.slane %v289_v59, 2  ;;  %v454_v10 = vsel %vm399_vm3, %v440_v55, %v441_v31 }
  0x48   :  { %v296_v40 = vmax.f32 %v294_v52, %v295_v60  ;;  %v307_v62 = vrot.slane %v306_v61, 2  ;;  %v313_v58 = vmax.f32 %v311_v57, %v312_v49  ;;  %v319_v63 = vrot.slane %v318_v6, 4 }
  0x49   :  { %v326_v11 = vrot.slane %v325_v7, 4  ;;  %v333_v12 = vrot.slane %v332_v4, 4  ;;  %v339_v15 = vsel %vm85_vm0, %v223_v56, -inf  ;;  %v453_v16 = vsel %vm397_vm4, %v451_v53, %v452_v5 }
  0x4a   :  { %v443_v13 = vrot.slane %v296_v40, 1  ;;  %v308_v14 = vmax.f32 %v306_v61, %v307_v62  ;;  %v314_v0 = vrot.slane %v313_v58, 2  ;;  %v320_v9 = vmax.f32 %v318_v6, %v319_v63 }
  0x4b   :  { %v327_v18 = vmax.f32 %v325_v7, %v326_v11  ;;  %v334_v20 = vmax.f32 %v332_v4, %v333_v12  ;;  %v300_v22 = vrot.slane %v299_v3, 2  ;;  %v340_v24 = vrot.slane %v339_v15, 4 }
  0x4c   :  { %v455_v21 = vsel %vm401_vm5, %v442_v8, %v443_v13  ;;  %v315_v23 = vmax.f32 %v313_v58, %v314_v0  ;;  %v321_v26 = vrot.slane %v320_v9, 2  ;;  %v309_v29 = vrot.slane %v308_v14, 1 }
  0x4d   :  { %v456_v25 = vsel %vm403_vm6, %v454_v10, %v455_v21  ;;  %v328_v1 = vrot.slane %v327_v18, 2  ;;  %v335_v27 = vrot.slane %v334_v20, 2  ;;  %v341_v33 = vmax.f32 %v339_v15, %v340_v24 }
  0x4e   :  { %v457_v28 = vsel %vm85_vm0, %v453_v16, %v456_v25  ;;  %v316_v32 = vrot.slane %v315_v23, 1  ;;  %v322_v34 = vmax.f32 %v320_v9, %v321_v26  ;;  %v301_v37 = vmax.f32 %v299_v3, %v300_v22 }
  0x4f   :  { %v329_v35 = vmax.f32 %v327_v18, %v328_v1  ;;  %v336_v36 = vmax.f32 %v334_v20, %v335_v27  ;;  %v342_v38 = vrot.slane %v341_v33, 2  ;;  %v346_v30 = vsel %vm85_vm0, %v224_v19, -inf  ;;  %469 = vst [vmem:[#allocation6] sm:$0xff] %v457_v28 }
  0x50   :  { %v323_v39 = vrot.slane %v322_v34, 1  ;;  %v347_v17 = vrot.slane %v346_v30, 4  ;;  %v310_v2 = vmax.f32 %v308_v14, %v309_v29  ;;  %v317_v44 = vmax.f32 %v315_v23, %v316_v32 }
  0x51   :  { %v330_v41 = vrot.slane %v329_v35, 1  ;;  %v337_v42 = vrot.slane %v336_v36, 1  ;;  %v343_v43 = vmax.f32 %v341_v33, %v342_v38  ;;  %v302_v48 = vrot.slane %v301_v37, 1 }
  0x52   :  { %v324_v45 = vmax.f32 %v322_v34, %v323_v39  ;;  %v348_v46 = vmax.f32 %v346_v30, %v347_v17  ;;  %v444_v50 = vrot.slane %v310_v2, 7  ;;  %v445_v31 = vrot.slane %v317_v44, 6 }
  0x53   :  { %v344_v47 = vrot.slane %v343_v43, 1  ;;  %v331_v51 = vmax.f32 %v329_v35, %v330_v41  ;;  %v338_v52 = vmax.f32 %v336_v36, %v337_v42  ;;  %v303_v57 = vmax.f32 %v301_v37, %v302_v48 }
  0x54   :  { %v349_v53 = vrot.slane %v348_v46, 2  ;;  %v446_v3 = vrot.slane %v324_v45, 5 }
  0x55   :  { %v345_v54 = vmax.f32 %v343_v43, %v344_v47  ;;  %v447_v60 = vrot.slane %v331_v51, 4  ;;  %v448_v61 = vrot.slane %v338_v52, 3  ;;  %v458_v56 = vsel %vm393_vm1, %v303_v57, %v444_v50 }
  0x56   :  { %v350_v55 = vmax.f32 %v348_v46, %v349_v53  ;;  %v459_v6 = vsel %vm395_vm2, %v445_v31, %v446_v3 }
  0x57   :  { %v449_v5 = vrot.slane %v345_v54, 2  ;;  %v461_v4 = vsel %vm399_vm3, %v447_v60, %v448_v61  ;;  %v460_v40 = vsel %vm397_vm4, %v458_v56, %v459_v6 }
  0x58   :  { %v351_v59 = vrot.slane %v350_v55, 1 }
  0x5a   :  { %v352_v49 = vmax.f32 %v350_v55, %v351_v59 }
  0x5c   :  { %v450_v7 = vrot.slane %v352_v49, 1 }
  0x5e   :  { %v462_v8 = vsel %vm401_vm5, %v449_v5, %v450_v7 }
  0x5f   :  { %v463_v62 = vsel %vm403_vm6, %v461_v4, %v462_v8 }
  0x60   :  { %v464_v58 = vsel %vm85_vm0, %v460_v40, %v463_v62 }
  0x61   :  { %470 = vst [vmem:[#allocation6 + $0x8] sm:$0xff] %v464_v58 }
  0x62   :  { %492 = dma.vmem_to_hbm [thread:$0]  %s488_s18, 256, %s490_s21, [#allocation7]  }
  0x63   :  { %583 = dma.done.wait [#allocation4], 256  }
  0x64   :  { %584 = vsyncadd [#allocation4], 4294967040 }
  0x65   :  { %585 = dma.done.wait [#allocation7], 256  }
  0x66   :  { %586 = vsyncadd [#allocation7], 4294967040 }
  0x67   :  { %501 = vsyncpa [#allocation3], 1 }
  0x68   :  { %502 = vsyncpa [#allocation4], 1 }
  0x69   :  { %503 = vsyncpa [#allocation7], 1 }

</bundles_post_ra>
